<compile_context>
chip_gen: v7x
topology: tpu7x:2x2x1
jax: 0.10.0
libtpu: 0.0.40
codegen_flags: <defaults>
</compile_context>

<pallas_src>
import math
import functools

import jax
import jax.numpy as jnp
from jax.experimental import pallas as pl
from jax.experimental.pallas import tpu as pltpu

NUM_HEADS = 4


def transformer_layer_kernel(x_ref, wqkv_ref, w_in_ref, b_in_ref,
                             w_out_ref, b_out_ref, w1_ref, w2_ref, o_ref,
                             *, num_heads, mxu_dtype):
    _, L, C = x_ref.shape
    H = num_heads
    D = C // H

    def mm(a, b):
        # MXU matmul: operands optionally downcast (bf16 on v6e/v7x), f32 accumulation.
        return jnp.dot(a.astype(mxu_dtype), b.astype(mxu_dtype),
                       preferred_element_type=jnp.float32)

    x = x_ref[0].astype(jnp.float32)                          # (L, C), one batch element

    # ---- fused q/k/v Linear (bias-free): single (L,C) x (C,3C) matmul ------
    qkv0 = mm(x, wqkv_ref[...])                               # (L, 3C)

    # ---- MultiheadAttention in_proj as one batched matmul -------------------
    # qkv0 -> (L, 3, C); w_in_ref is (3, C, C) pre-transposed; b_in_ref is (3, 1, C).
    qkv0 = qkv0.reshape(L, 3, C)
    qkv = jnp.einsum('lbc,bco->blo',
                     qkv0.astype(mxu_dtype), w_in_ref[...].astype(mxu_dtype),
                     preferred_element_type=jnp.float32)      # (3, L, C)
    qkv = qkv + b_in_ref[...]

    scale = 1.0 / math.sqrt(D)                                # PyTorch scales q by D**-0.5
    q = (qkv[0] * scale).reshape(L, H, D)
    k = qkv[1].reshape(L, H, D)
    v = qkv[2].reshape(L, H, D)

    # ---- scaled dot-product attention, batched over heads (no Python loops) -
    s = jnp.einsum('lhd,mhd->hlm',
                   q.astype(mxu_dtype), k.astype(mxu_dtype),
                   preferred_element_type=jnp.float32)        # (H, L, L)
    s = s - jnp.max(s, axis=-1, keepdims=True)                # softmax strictly in f32
    p = jnp.exp(s)
    p = p * pl.reciprocal(jnp.sum(p, axis=-1, keepdims=True), approx=True)
    attn = jnp.einsum('hlm,mhd->lhd',
                      p.astype(mxu_dtype), v.astype(mxu_dtype),
                      preferred_element_type=jnp.float32).reshape(L, C)

    # ---- out_proj (bias=True) + residual -------------------------------------
    y = mm(attn, w_out_ref[...]) + b_out_ref[...] + x          # (L, C)

    # ---- fc2(fc1(y)) + residual ----------------------------------------------
    z = mm(mm(y, w1_ref[...]), w2_ref[...]) + y

    o_ref[0] = z.astype(o_ref.dtype)


def transformer_layer(x, params, num_heads=NUM_HEADS, mxu_dtype=jnp.float32):
    """x: (L, N, C) — seq_len, batch, embed_dim (PyTorch MHA default batch_first=False)."""
    wq, wk, wv, w_in, b_in, w_out, b_out, w1, w2 = params
    L, N, C = x.shape

    # Layout-only weight prep (no math): pack q/k/v into one weight and pre-transpose
    # everything to (in_features, out_features) so the kernel never needs .T.
    wqkv_t = jnp.concatenate([wq, wk, wv], axis=0).T           # (C, 3C)
    w_in_b = w_in.reshape(3, C, C).transpose(0, 2, 1)          # (3, C, C), each (in, out)
    b_in_b = b_in.reshape(3, 1, C)                             # (3, 1, C)
    w_out_t = w_out.T                                          # (C, C)
    w1_t, w2_t = w1.T, w2.T                                    # (C, C)
    xb = x.transpose(1, 0, 2)                                  # (N, L, C): batch-major for the grid

    kernel = functools.partial(transformer_layer_kernel,
                               num_heads=num_heads, mxu_dtype=mxu_dtype)
    const2 = lambda n: (0, 0)
    const3 = lambda n: (0, 0, 0)
    out = pl.pallas_call(
        kernel,
        out_shape=jax.ShapeDtypeStruct((N, L, C), x.dtype),
        grid=(N,),
        in_specs=[
            pl.BlockSpec((1, L, C), lambda n: (n, 0, 0)),      # x: one batch element per step
            pl.BlockSpec((C, 3 * C), const2),                  # fused qkv weight (resident)
            pl.BlockSpec((3, C, C), const3),                   # in_proj weights (resident)
            pl.BlockSpec((3, 1, C), const3),                   # in_proj bias
            pl.BlockSpec((C, C), const2),                      # out_proj weight
            pl.BlockSpec((1, C), const2),                      # out_proj bias
            pl.BlockSpec((C, C), const2),                      # fc1 weight
            pl.BlockSpec((C, C), const2),                      # fc2 weight
        ],
        out_specs=pl.BlockSpec((1, L, C), lambda n: (n, 0, 0)),
        compiler_params=pltpu.CompilerParams(
            dimension_semantics=("parallel",)),                # both TCs get work on v7x
    )(xb, wqkv_t, w_in_b, b_in_b, w_out_t, b_out, w1_t, w2_t)
    return out.transpose(1, 0, 2)                              # back to (L, N, C)


def reference_forward(x, params, num_heads=NUM_HEADS):
    """Pure-JAX reference mirroring PyTorch TransformerLayer.forward."""
    wq, wk, wv, w_in, b_in, w_out, b_out, w1, w2 = params
    L, N, C = x.shape
    H = num_heads
    D = C // H
    xt = x.reshape(L * N, C)
    q0, k0, v0 = xt @ wq.T, xt @ wk.T, xt @ wv.T
    q = q0 @ w_in[0:C].T + b_in[:, 0:C]
    k = k0 @ w_in[C:2 * C].T + b_in[:, C:2 * C]
    v = v0 @ w_in[2 * C:3 * C].T + b_in[:, 2 * C:3 * C]
    q = q * (1.0 / math.sqrt(D))
    qh = q.reshape(L, N, H, D).transpose(1, 2, 0, 3)
    kh = k.reshape(L, N, H, D).transpose(1, 2, 0, 3)
    vh = v.reshape(L, N, H, D).transpose(1, 2, 0, 3)
    s = jnp.einsum('nhld,nhmd->nhlm', qh, kh)
    p = jax.nn.softmax(s, axis=-1)
    a = jnp.einsum('nhlm,nhmd->nhld', p, vh)
    a = a.transpose(2, 0, 1, 3).reshape(L * N, C)
    y = a @ w_out.T + b_out + xt
    z = (y @ w1.T) @ w2.T + y
    return z.reshape(L, N, C)


def make_params(key, c):
    ks = jax.random.split(key, 9)
    scale = 0.1
    wq = scale * jax.random.normal(ks[0], (c, c), jnp.float32)
    wk = scale * jax.random.normal(ks[1], (c, c), jnp.float32)
    wv = scale * jax.random.normal(ks[2], (c, c), jnp.float32)
    w_in = scale * jax.random.normal(ks[3], (3 * c, c), jnp.float32)
    b_in = scale * jax.random.normal(ks[4], (1, 3 * c), jnp.float32)
    w_out = scale * jax.random.normal(ks[5], (c, c), jnp.float32)
    b_out = scale * jax.random.normal(ks[6], (1, c), jnp.float32)
    w1 = scale * jax.random.normal(ks[7], (c, c), jnp.float32)
    w2 = scale * jax.random.normal(ks[8], (c, c), jnp.float32)
    return (wq, wk, wv, w_in, b_in, w_out, b_out, w1, w2)


if __name__ == "__main__":
    key = jax.random.PRNGKey(0)
    kx, kp = jax.random.split(key)

    L, N, C = 8, 2, 32          # seq_len, batch, embed_dim (C divisible by NUM_HEADS)
    x = jax.random.normal(kx, (L, N, C), jnp.float32)
    params = make_params(kp, C)

    out = transformer_layer(x, params)            # f32 MXU operands (bf16 is opt-in)
    out = jax.block_until_ready(out)

    ref = reference_forward(x, params)
    assert out.shape == (L, N, C)
    # Tolerance covers the EUP approximate reciprocal in the softmax; pass
    # approx=False (or divide) to tighten back to ~1e-5.
    assert jnp.allclose(out, ref, rtol=2e-3, atol=2e-3), \
        f"max abs err {jnp.max(jnp.abs(out - ref))}"

    print("KERNEL_OK")
</pallas_src>

<mosaic_0001>
module attributes {stable_mosaic.version = 11 : i64} {
  func.func @transformer_layer_kernel(%arg0: i32, %arg1: memref<1x8x32xf32, #tpu.memory_space<vmem>>, %arg2: memref<32x96xf32, #tpu.memory_space<vmem>>, %arg3: memref<3x32x32xf32, #tpu.memory_space<vmem>>, %arg4: memref<3x1x32xf32, #tpu.memory_space<vmem>>, %arg5: memref<32x32xf32, #tpu.memory_space<vmem>>, %arg6: memref<1x32xf32, #tpu.memory_space<vmem>>, %arg7: memref<32x32xf32, #tpu.memory_space<vmem>>, %arg8: memref<32x32xf32, #tpu.memory_space<vmem>>, %arg9: memref<1x8x32xf32, #tpu.memory_space<vmem>>) attributes {dimension_semantics = [#tpu.dimension_semantics<parallel>], iteration_bounds = array<i64: 2>, scalar_prefetch = 0 : i64, scratch_operands = 0 : i64, tpu.core_type = #tpu.core_type<tc>, window_params = [{transform_indices = @transform_0, window_bounds = array<i64: 1, 8, 32>}, {pipeline_mode = #tpu.pipeline_mode<synchronous>, transform_indices = @transform_1, window_bounds = array<i64: 32, 96>}, {pipeline_mode = #tpu.pipeline_mode<synchronous>, transform_indices = @transform_2, window_bounds = array<i64: 3, 32, 32>}, {pipeline_mode = #tpu.pipeline_mode<synchronous>, transform_indices = @transform_3, window_bounds = array<i64: 3, 1, 32>}, {pipeline_mode = #tpu.pipeline_mode<synchronous>, transform_indices = @transform_4, window_bounds = array<i64: 32, 32>}, {pipeline_mode = #tpu.pipeline_mode<synchronous>, transform_indices = @transform_5, window_bounds = array<i64: 1, 32>}, {pipeline_mode = #tpu.pipeline_mode<synchronous>, transform_indices = @transform_6, window_bounds = array<i64: 32, 32>}, {pipeline_mode = #tpu.pipeline_mode<synchronous>, transform_indices = @transform_7, window_bounds = array<i64: 32, 32>}, {transform_indices = @transform_8, window_bounds = array<i64: 1, 8, 32>}]} {
    %c0 = arith.constant 0 : index
    %c0_0 = arith.constant 0 : index
    %c0_1 = arith.constant 0 : index
    %0 = vector.load %arg1[%c0, %c0_0, %c0_1] : memref<1x8x32xf32, #tpu.memory_space<vmem>>, vector<1x8x32xf32>
    %1 = vector.shape_cast %0 : vector<1x8x32xf32> to vector<8x32xf32>
    %c0_2 = arith.constant 0 : index
    %c0_3 = arith.constant 0 : index
    %2 = vector.load %arg2[%c0_2, %c0_3] : memref<32x96xf32, #tpu.memory_space<vmem>>, vector<32x96xf32>
    %cst = arith.constant dense<0.000000e+00> : vector<8x96xf32>
    %3 = tpu.matmul %1, %2, %cst {dimension_numbers = #tpu.dot_dimension_numbers<[1], [0], [0], [1], [0, 0, 1, 1], [], []>} : vector<8x32xf32>, vector<32x96xf32>, vector<8x96xf32> -> vector<8x96xf32>
    %4 = vector.shape_cast %3 : vector<8x96xf32> to vector<8x3x32xf32>
    %c0_4 = arith.constant 0 : index
    %c0_5 = arith.constant 0 : index
    %c0_6 = arith.constant 0 : index
    %5 = vector.load %arg3[%c0_4, %c0_5, %c0_6] : memref<3x32x32xf32, #tpu.memory_space<vmem>>, vector<3x32x32xf32>
    "tpu.trace_start"() <{level = 10 : i32, message = "lbc,bco->blo"}> : () -> ()
    %cst_7 = arith.constant dense<0.000000e+00> : vector<3x8x32xf32>
    %6 = tpu.matmul %4, %5, %cst_7 {dimension_numbers = #tpu.dot_dimension_numbers<[2], [1], [0], [2], [0, 1, 0, 0, 1, 2], [1], [0]>} : vector<8x3x32xf32>, vector<3x32x32xf32>, vector<3x8x32xf32> -> vector<3x8x32xf32>
    "tpu.trace_stop"() : () -> ()
    %c0_8 = arith.constant 0 : index
    %c0_9 = arith.constant 0 : index
    %c0_10 = arith.constant 0 : index
    %7 = vector.load %arg4[%c0_8, %c0_9, %c0_10] : memref<3x1x32xf32, #tpu.memory_space<vmem>>, vector<3x1x32xf32>
    %8 = vector.broadcast %7 : vector<3x1x32xf32> to vector<3x8x32xf32>
    %9 = arith.addf %6, %8 : vector<3x8x32xf32>
    %10 = vector.extract_strided_slice %9 {offsets = [0, 0, 0], sizes = [1, 8, 32], strides = [1, 1, 1]} : vector<3x8x32xf32> to vector<1x8x32xf32>
    %11 = vector.shape_cast %10 : vector<1x8x32xf32> to vector<8x32xf32>
    %cst_11 = arith.constant 0.353553385 : f32
    %12 = vector.broadcast %cst_11 : f32 to vector<8x32xf32>
    %13 = arith.mulf %11, %12 : vector<8x32xf32>
    %14 = vector.shape_cast %13 : vector<8x32xf32> to vector<8x4x8xf32>
    %15 = vector.extract_strided_slice %9 {offsets = [1, 0, 0], sizes = [1, 8, 32], strides = [1, 1, 1]} : vector<3x8x32xf32> to vector<1x8x32xf32>
    %16 = vector.shape_cast %15 : vector<1x8x32xf32> to vector<8x32xf32>
    %17 = vector.shape_cast %16 : vector<8x32xf32> to vector<8x4x8xf32>
    %18 = vector.extract_strided_slice %9 {offsets = [2, 0, 0], sizes = [1, 8, 32], strides = [1, 1, 1]} : vector<3x8x32xf32> to vector<1x8x32xf32>
    %19 = vector.shape_cast %18 : vector<1x8x32xf32> to vector<8x32xf32>
    %20 = vector.shape_cast %19 : vector<8x32xf32> to vector<8x4x8xf32>
    "tpu.trace_start"() <{level = 10 : i32, message = "lhd,mhd->hlm"}> : () -> ()
    %cst_12 = arith.constant dense<0.000000e+00> : vector<4x8x8xf32>
    %21 = tpu.matmul %14, %17, %cst_12 {dimension_numbers = #tpu.dot_dimension_numbers<[2], [2], [0], [0], [0, 1, 0, 0, 1, 0], [1], [1]>} : vector<8x4x8xf32>, vector<8x4x8xf32>, vector<4x8x8xf32> -> vector<4x8x8xf32>
    "tpu.trace_stop"() : () -> ()
    %cst_13 = arith.constant dense<0xFF800000> : vector<4x8xf32>
    %22 = vector.multi_reduction <maximumf>, %21, %cst_13 [2] : vector<4x8x8xf32> to vector<4x8xf32>
    %23 = vector.shape_cast %22 : vector<4x8xf32> to vector<4x8x1xf32>
    %24 = vector.broadcast %23 : vector<4x8x1xf32> to vector<4x8x8xf32>
    %25 = arith.subf %21, %24 : vector<4x8x8xf32>
    %26 = math.exp %25 : vector<4x8x8xf32>
    %cst_14 = arith.constant dense<0.000000e+00> : vector<4x8xf32>
    %27 = vector.multi_reduction <add>, %26, %cst_14 [2] : vector<4x8x8xf32> to vector<4x8xf32>
    %28 = vector.shape_cast %27 : vector<4x8xf32> to vector<4x8x1xf32>
    %29 = tpu.reciprocal %28 {approx = true} : vector<4x8x1xf32> -> vector<4x8x1xf32>
    %30 = vector.broadcast %29 : vector<4x8x1xf32> to vector<4x8x8xf32>
    %31 = arith.mulf %26, %30 : vector<4x8x8xf32>
    "tpu.trace_start"() <{level = 10 : i32, message = "hlm,mhd->lhd"}> : () -> ()
    %cst_15 = arith.constant dense<0.000000e+00> : vector<4x8x8xf32>
    %32 = tpu.matmul %20, %31, %cst_15 {dimension_numbers = #tpu.dot_dimension_numbers<[0], [2], [2], [1], [0, 1, 0, 2, 1, 1], [1], [0]>} : vector<8x4x8xf32>, vector<4x8x8xf32>, vector<4x8x8xf32> -> vector<4x8x8xf32>
    %33 = tpu.transpose %32, [2, 0, 1] : vector<4x8x8xf32> -> vector<8x4x8xf32>
    "tpu.trace_stop"() : () -> ()
    %34 = vector.shape_cast %33 : vector<8x4x8xf32> to vector<8x32xf32>
    %c0_16 = arith.constant 0 : index
    %c0_17 = arith.constant 0 : index
    %35 = vector.load %arg5[%c0_16, %c0_17] : memref<32x32xf32, #tpu.memory_space<vmem>>, vector<32x32xf32>
    %cst_18 = arith.constant dense<0.000000e+00> : vector<8x32xf32>
    %36 = tpu.matmul %34, %35, %cst_18 {dimension_numbers = #tpu.dot_dimension_numbers<[1], [0], [0], [1], [0, 0, 1, 1], [], []>} : vector<8x32xf32>, vector<32x32xf32>, vector<8x32xf32> -> vector<8x32xf32>
    %c0_19 = arith.constant 0 : index
    %c0_20 = arith.constant 0 : index
    %37 = vector.load %arg6[%c0_19, %c0_20] : memref<1x32xf32, #tpu.memory_space<vmem>>, vector<1x32xf32>
    %38 = vector.broadcast %37 : vector<1x32xf32> to vector<8x32xf32>
    %39 = arith.addf %36, %38 : vector<8x32xf32>
    %40 = arith.addf %39, %1 : vector<8x32xf32>
    %c0_21 = arith.constant 0 : index
    %c0_22 = arith.constant 0 : index
    %41 = vector.load %arg7[%c0_21, %c0_22] : memref<32x32xf32, #tpu.memory_space<vmem>>, vector<32x32xf32>
    %cst_23 = arith.constant dense<0.000000e+00> : vector<8x32xf32>
    %42 = tpu.matmul %40, %41, %cst_23 {dimension_numbers = #tpu.dot_dimension_numbers<[1], [0], [0], [1], [0, 0, 1, 1], [], []>} : vector<8x32xf32>, vector<32x32xf32>, vector<8x32xf32> -> vector<8x32xf32>
    %c0_24 = arith.constant 0 : index
    %c0_25 = arith.constant 0 : index
    %43 = vector.load %arg8[%c0_24, %c0_25] : memref<32x32xf32, #tpu.memory_space<vmem>>, vector<32x32xf32>
    %cst_26 = arith.constant dense<0.000000e+00> : vector<8x32xf32>
    %44 = tpu.matmul %42, %43, %cst_26 {dimension_numbers = #tpu.dot_dimension_numbers<[1], [0], [0], [1], [0, 0, 1, 1], [], []>} : vector<8x32xf32>, vector<32x32xf32>, vector<8x32xf32> -> vector<8x32xf32>
    %45 = arith.addf %44, %40 : vector<8x32xf32>
    %c0_27 = arith.constant 0 : index
    %c0_28 = arith.constant 0 : index
    %c0_29 = arith.constant 0 : index
    %46 = vector.load %arg9[%c0_27, %c0_28, %c0_29] : memref<1x8x32xf32, #tpu.memory_space<vmem>>, vector<1x8x32xf32>
    %47 = vector.shape_cast %46 : vector<1x8x32xf32> to vector<8x32xf32>
    %48 = vector.shape_cast %45 : vector<8x32xf32> to vector<1x8x32xf32>
    tpu.vector_store %arg9[%c0_27, %c0_28, %c0_29], %48 {strides = array<i32>} : memref<1x8x32xf32, #tpu.memory_space<vmem>>, vector<1x8x32xf32>,
    return
  }
  func.func @transform_0(%arg0: i32) -> (i32, i32, i32) {
    %c0_i32 = arith.constant 0 : i32
    %c0_i32_0 = arith.constant 0 : i32
    %c0_i32_1 = arith.constant 0 : i32
    return %arg0, %c0_i32, %c0_i32_0 : i32, i32, i32
  }
  func.func @transform_1(%arg0: i32) -> (i32, i32) {
    %c0_i32 = arith.constant 0 : i32
    %c0_i32_0 = arith.constant 0 : i32
    %c0_i32_1 = arith.constant 0 : i32
    return %c0_i32, %c0_i32_0 : i32, i32
  }
  func.func @transform_2(%arg0: i32) -> (i32, i32, i32) {
    %c0_i32 = arith.constant 0 : i32
    %c0_i32_0 = arith.constant 0 : i32
    %c0_i32_1 = arith.constant 0 : i32
    %c0_i32_2 = arith.constant 0 : i32
    return %c0_i32, %c0_i32_0, %c0_i32_1 : i32, i32, i32
  }
  func.func @transform_3(%arg0: i32) -> (i32, i32, i32) {
    %c0_i32 = arith.constant 0 : i32
    %c0_i32_0 = arith.constant 0 : i32
    %c0_i32_1 = arith.constant 0 : i32
    %c0_i32_2 = arith.constant 0 : i32
    return %c0_i32, %c0_i32_0, %c0_i32_1 : i32, i32, i32
  }
  func.func @transform_4(%arg0: i32) -> (i32, i32) {
    %c0_i32 = arith.constant 0 : i32
    %c0_i32_0 = arith.constant 0 : i32
    %c0_i32_1 = arith.constant 0 : i32
    return %c0_i32, %c0_i32_0 : i32, i32
  }
  func.func @transform_5(%arg0: i32) -> (i32, i32) {
    %c0_i32 = arith.constant 0 : i32
    %c0_i32_0 = arith.constant 0 : i32
    %c0_i32_1 = arith.constant 0 : i32
    return %c0_i32, %c0_i32_0 : i32, i32
  }
  func.func @transform_6(%arg0: i32) -> (i32, i32) {
    %c0_i32 = arith.constant 0 : i32
    %c0_i32_0 = arith.constant 0 : i32
    %c0_i32_1 = arith.constant 0 : i32
    return %c0_i32, %c0_i32_0 : i32, i32
  }
  func.func @transform_7(%arg0: i32) -> (i32, i32) {
    %c0_i32 = arith.constant 0 : i32
    %c0_i32_0 = arith.constant 0 : i32
    %c0_i32_1 = arith.constant 0 : i32
    return %c0_i32, %c0_i32_0 : i32, i32
  }
  func.func @transform_8(%arg0: i32) -> (i32, i32, i32) {
    %c0_i32 = arith.constant 0 : i32
    %c0_i32_0 = arith.constant 0 : i32
    %c0_i32_1 = arith.constant 0 : i32
    return %arg0, %c0_i32, %c0_i32_0 : i32, i32, i32
  }
}

</mosaic_0001>

<bundles_post_ra>
// kernel: tpu_custom_call.1
= control target key start
LH: loop header
LB: loop body
LE: loop exit
PB: predicated region body
PF: predicated region fallthrough
CT: control target
= control target key end

     0   :  { %s3427_s0 = inlined_call_operand.hbm [shape: f32[2,8,32], index: 0, kind: input, shape index: {}]   ;;  %s3428_s1 = inlined_call_operand.hbm [shape: f32[32,96], index: 1, kind: input, shape index: {}]   ;;  %s3429_s2 = inlined_call_operand.hbm [shape: f32[3,32,32], index: 2, kind: input, shape index: {}]   ;;  %s3430_s3 = inlined_call_operand.vmem [shape: f32[3,1,32], index: 3, kind: input, shape index: {}]   ;;  %s3431_s4 = inlined_call_operand.hbm [shape: f32[32,32], index: 4, kind: input, shape index: {}]   ;;  %s3432_s5 = inlined_call_operand.vmem [shape: f32[1,32], index: 5, kind: input, shape index: {}]   ;;  %s3433_s6 = inlined_call_operand.hbm [shape: f32[32,32], index: 6, kind: input, shape index: {}]   ;;  %s3434_s7 = inlined_call_operand.hbm [shape: f32[32,32], index: 7, kind: input, shape index: {}]   ;;  %s3435_s8 = inlined_call_operand.hbm [shape: f32[2,8,32], index: 8, kind: output, shape index: {}]  }
   0x1   :  { %3439 = sst [smem:[#allocation19_spill]] %s3428_s1 }
   0x2   :  { %13 = vsyncpa [#allocation3], 0 }
   0x3   :  { %15 = vsyncpa [#allocation3 + $0x1], 0 }
   0x4   :  { %16 = vsyncpa [#allocation6], 0 }
   0x5   :  { %17 = vsyncpa [#allocation9], 0 }
   0x6   :  { %18 = vsyncpa [#allocation12], 0 }
   0x7   :  { %19 = vsyncpa [#allocation4], 0 }
   0x8   :  { %21 = vsyncpa [#allocation4 + $0x1], 0  ;;  %s3003_s27 = smov 0   ;;  %s3005_s28 = smov 0  }
   0x9   :  { %s3007_s29 = smov 0   ;;  %s3009_s30 = smov 0  }
   0xa LB: > { %s2936_s9 = smov [#allocation5]   ;;  %s3024_s11 = sadd.s32 4294967295, %s2934_s30   ;;  %s2934_s30 = sphi %s3009_s30, %s3462_s30   ;;  %s2930_s29 = sphi %s3007_s29, %s3461_s29   ;;  %s2926_s28 = sphi %s3005_s28, %s3460_s28   ;;  %s2922_s27 = sphi %s3003_s27, %s3459_s27  }
   0xb   : > { %s243_s10 = sshll.u32 %s2936_s9, 4  ;;  %p2302_p0 = scmp.ge.s32.totalorder %s2934_s30, 1  ;;  %s3029_s10 = int_to_ptr.vmem [resolvable:$true] %s243_s10 }
   0xc   : > { %p3436_p1 = scmp.eq.s32.totalorder %s3024_s11, 0  ;;  %p231_p2 = scmp.lt.s32.totalorder %s2934_s30, 3 }
   0xd   : > { %s2937_s13 = smov [#allocation8]   ;;  %s2938_s16 = smov [#allocation7]  }
   0xe   : > { %p3031_p3 = pnand %p2302_p0, %p231_p2  ;;  %s272_s14 = sshll.u32 %s2937_s13, 4  ;;  %s3044_s14 = int_to_ptr.vmem [resolvable:$true] %s272_s14 }
   0xf   : > { %s256_s17 = sshll.u32 %s2938_s16, 4  ;;  %s3442_s1 = sld [smem:[#allocation19_spill]]  ;;  %s3046_s17 = int_to_ptr.vmem [resolvable:$true] %s256_s17 }
  0x10   : > { %s3440_s12 = scalar_select %p3031_p3, 1, 0 }
  0x11   : > { %p2582_p5 = pneg %p3031_p3 }
  0x13   : > { %p3040_p6 = pnand %p2582_p5, %p3436_p1 }
  0x15   : > { %s2686_s20 = scalar_lea.hbm %s3442_s1, 512  ;;  %p3056_p8 = pneg %p3040_p6 }
  0x16   : > { %p2687_p7 = scmp.ne.s32.totalorder %s3442_s1, %s2686_s20  ;;  %p2693_p11 = scmp.lt.u32.totalorder %s2686_s20, %s3442_s1 }
  0x18   : > { %p2689_p9 = pnand %p3056_p8, %p2687_p7 }
  0x1a   : > { %p2690_p10 = pneg %p2689_p9 }
  0x1c   : > { %p2695_p12 = pnand %p2693_p11, %p2690_p10 }
  0x1e   : > { %2698 = shalt.err (!%p2695_p12)
}
  0x1f   : > { %s2699_s26 = scalar_lea.vmem %s3029_s10, 512  ;;  %p2707_p5 = scmp.lt.s32.totalorder %s3029_s10, %s3029_s10 }
  0x20   : > { %p2700_p13 = scmp.ne.s32.totalorder %s3029_s10, %s2699_s26  ;;  %p2708_p4 = scmp.lt.s32.totalorder %s2699_s26, %s2699_s26 }
  0x22   : > { %p2702_p0 = pnand %p2700_p13, %p3056_p8  ;;  %p2709_p7 = por %p2708_p4, %p2707_p5 }
  0x24   : > { %p2703_p2 = pneg %p2702_p0 }
  0x26   : > { %p2710_p9 = pnand %p2709_p7, %p2703_p2 }
  0x28   : > { %2713 = shalt.err (!%p2710_p9)
}
  0x29   : > { %s2939_s9 = smov 128   ;;  %s2940_s13 = smov 8  }
  0x2a   : > { %2585 = dma.hbm_to_vmem [thread:$0]  (!%p3040_p6), %s3442_s1, 512, %s3029_s10, [#allocation6], %s2939_s9, %s2939_s9, %s2940_s13  }
  0x2b   : > { %s2714_s21 = scalar_lea.hbm %s3431_s4, 512 }
  0x2c   : > { %p2715_p4 = scmp.ne.s32.totalorder %s3431_s4, %s2714_s21  ;;  %p2721_p12 = scmp.lt.u32.totalorder %s2714_s21, %s3431_s4 }
  0x2e   : > { %p2717_p10 = pnand %p2715_p4, %p3056_p8 }
  0x30   : > { %p2718_p11 = pneg %p2717_p10 }
  0x32   : > { %p2723_p13 = pnand %p2721_p12, %p2718_p11 }
  0x34   : > { %2726 = shalt.err (!%p2723_p13)
}
  0x35   : > { %s2727_s10 = scalar_lea.vmem %s3044_s14, 512  ;;  %p2735_p7 = scmp.lt.s32.totalorder %s3044_s14, %s3044_s14 }
  0x36   : > { %p2728_p0 = scmp.ne.s32.totalorder %s3044_s14, %s2727_s10  ;;  %p2736_p9 = scmp.lt.s32.totalorder %s2727_s10, %s2727_s10 }
  0x38   : > { %p2730_p2 = pnand %p2728_p0, %p3056_p8  ;;  %p2737_p4 = por %p2736_p9, %p2735_p7 }
  0x3a   : > { %p2731_p5 = pneg %p2730_p2 }
  0x3c   : > { %p2738_p10 = pnand %p2737_p4, %p2731_p5 }
  0x3e   : > { %2741 = shalt.err (!%p2738_p10)
}
  0x3f   : > { %2591 = dma.hbm_to_vmem [thread:$0]  (!%p3040_p6), %s3431_s4, 512, %s3044_s14, [#allocation9], %s2939_s9, %s2939_s9, %s2940_s13  }
  0x40   : > { %s2742_s21 = scalar_lea.hbm %s3429_s2, 1536 }
  0x41   : > { %p2743_p11 = scmp.ne.s32.totalorder %s3429_s2, %s2742_s21  ;;  %p2749_p0 = scmp.lt.u32.totalorder %s2742_s21, %s3429_s2 }
  0x43   : > { %p2745_p12 = pnand %p2743_p11, %p3056_p8 }
  0x45   : > { %p2746_p13 = pneg %p2745_p12 }
  0x47   : > { %p2751_p2 = pnand %p2749_p0, %p2746_p13 }
  0x49   : > { %2754 = shalt.err (!%p2751_p2)
}
  0x4a   : > { %s2755_s14 = scalar_lea.vmem %s3046_s17, 1536  ;;  %p2763_p4 = scmp.lt.s32.totalorder %s3046_s17, %s3046_s17 }
  0x4b   : > { %p2756_p5 = scmp.ne.s32.totalorder %s3046_s17, %s2755_s14  ;;  %p2764_p10 = scmp.lt.s32.totalorder %s2755_s14, %s2755_s14 }
  0x4d   : > { %p2758_p7 = pnand %p2756_p5, %p3056_p8  ;;  %p2765_p11 = por %p2764_p10, %p2763_p4 }
  0x4f   : > { %p2759_p9 = pneg %p2758_p7 }
  0x51   : > { %p2766_p12 = pnand %p2765_p11, %p2759_p9 }
  0x53   : > { %2769 = shalt.err (!%p2766_p12)
}
  0x54   : > { %2588 = dma.hbm_to_vmem [thread:$0]  (!%p3040_p6), %s3429_s2, 1536, %s3046_s17, [#allocation6], %s2939_s9, %s2939_s9, %s2940_s13  }
  0x55   : > { %s2941_s18 = smov [#allocation10]   ;;  %s2942_s20 = smov [#allocation11]  }
  0x56   : > { %s288_s19 = sshll.u32 %s2941_s18, 4  ;;  %s301_s21 = sshll.u32 %s2942_s20, 4  ;;  %s289_s19 = int_to_ptr.vmem [resolvable:$true] %s288_s19  ;;  %s302_s21 = int_to_ptr.vmem [resolvable:$true] %s301_s21 }
  0x57   : > { %s2770_s25 = scalar_lea.hbm %s3433_s6, 512 }
  0x58   : > { %p2771_p13 = scmp.ne.s32.totalorder %s3433_s6, %s2770_s25  ;;  %p2777_p5 = scmp.lt.u32.totalorder %s2770_s25, %s3433_s6 }
  0x5a   : > { %p2773_p0 = pnand %p2771_p13, %p3056_p8 }
  0x5c   : > { %p2774_p2 = pneg %p2773_p0 }
  0x5e   : > { %p2779_p7 = pnand %p2777_p5, %p2774_p2 }
  0x60   : > { %2782 = shalt.err (!%p2779_p7)
}
  0x61   : > { %s2783_s17 = scalar_lea.vmem %s289_s19, 512  ;;  %p2791_p11 = scmp.lt.s32.totalorder %s289_s19, %s289_s19 }
  0x62   : > { %p2784_p9 = scmp.ne.s32.totalorder %s289_s19, %s2783_s17  ;;  %p2792_p12 = scmp.lt.s32.totalorder %s2783_s17, %s2783_s17 }
  0x64   : > { %p2786_p4 = pnand %p2784_p9, %p3056_p8  ;;  %p2793_p1 = por %p2792_p12, %p2791_p11 }
  0x66   : > { %p2787_p10 = pneg %p2786_p4 }
  0x68   : > { %p2794_p3 = pnand %p2793_p1, %p2787_p10 }
  0x6a   : > { %2797 = shalt.err (!%p2794_p3)
}
  0x6b   : > { %2594 = dma.hbm_to_vmem [thread:$0]  (!%p3040_p6), %s3433_s6, 512, %s289_s19, [#allocation9], %s2939_s9, %s2939_s9, %s2940_s13  }
  0x6c   : > { %s2798_s22 = scalar_lea.hbm %s3434_s7, 512 }
  0x6d   : > { %p2799_p1 = scmp.ne.s32.totalorder %s3434_s7, %s2798_s22  ;;  %p2805_p0 = scmp.lt.u32.totalorder %s2798_s22, %s3434_s7 }
  0x6f   : > { %p2801_p3 = pnand %p2799_p1, %p3056_p8 }
  0x71   : > { %p2802_p13 = pneg %p2801_p3 }
  0x73   : > { %p2807_p2 = pnand %p2805_p0, %p2802_p13 }
  0x75   : > { %2810 = shalt.err (!%p2807_p2)
}
  0x76   : > { %s2811_s10 = scalar_lea.vmem %s302_s21, 512  ;;  %p2819_p4 = scmp.lt.s32.totalorder %s302_s21, %s302_s21 }
  0x77   : > { %p2812_p5 = scmp.ne.s32.totalorder %s302_s21, %s2811_s10  ;;  %p2820_p10 = scmp.lt.s32.totalorder %s2811_s10, %s2811_s10 }
  0x79   : > { %p2814_p7 = pnand %p2812_p5, %p3056_p8  ;;  %p2821_p11 = por %p2820_p10, %p2819_p4 }
  0x7b   : > { %p2815_p9 = pneg %p2814_p7 }
  0x7d   : > { %p2822_p12 = pnand %p2821_p11, %p2815_p9 }
  0x7f   : > { %2825 = shalt.err (!%p2822_p12)
}
  0x80   : > { %2597 = dma.hbm_to_vmem [thread:$0]  (!%p3040_p6), %s3434_s7, 512, %s302_s21, [#allocation12], %s2939_s9, %s2939_s9, %s2940_s13  }
  0x81   : > { %s2301_s15 = sadd.s32 4294967294, %s2934_s30   ;;  %s3176_s23 = sadd.s32 1, %s2934_s30  }
  0x82   : > { %s34_s1 = sadd.s32 1, %s2930_s29  ;;  %s31_s16 = ssub.s32 %s2934_s30, %s3176_s23 }
  0x83   : > { %p41_p8 = scmp.ne.s32.totalorder %s2930_s29, %s2926_s28  ;;  %p32_p1 = scmp.eq.s32.totalorder %s31_s16, 0 }
  0x84   : > { %p42_p3 = scmp.eq.s32.totalorder %s2934_s30, 0  ;;  %p47_p13 = scmp.ne.s32.totalorder %s2926_s28, %s2922_s27 }
  0x85   : > { %p218_p0 = scmp.eq.s32.totalorder %s3024_s11, 1  ;;  %p3444_p5 = scmp.eq.s32.totalorder %s3024_s11, 0 }
  0x86   : > { %s3188_s18 = scalar_select %p32_p1, %s2930_s29, %s34_s1  }
  0x87   : > { %p43_p2 = por %p42_p3, %p41_p8  ;;  %p3192_p7 = por %p3444_p5, %p47_p13 }
  0x88   : > { %p3196_p6 = por %p218_p0, %p41_p8  ;;  %p224_p9 = scmp.eq.s32.totalorder %s2301_s15, 1 }
  0x89   : > { %p2611_p4 = scmp.lt.s32.totalorder %s2934_s30, 2  ;;  %s315_s13 = sand.u32 1, %s2930_s29  }
  0x8a   : > { %s3446_s9 = scalar_select %p3196_p6, 1, 0 }
  0x8b   : > { %p3202_p10 = por %p224_p9, %p47_p13  ;;  %s2309_s22 = sshll.u32 %s315_s13, 3 }
  0x8c   : > { %s2310_s24 = sshll.u32 %s2934_s30, 7  ;;  %s319_s10 = scalar_lea.vmem [#allocation2], %s2309_s22 }
  0x8d   : > { %s3447_s21 = scalar_select %p3202_p10, 1, 0 }
  0x8e   : > { %s3210_s14 = scalar_lea.hbm %s3427_s0, %s2310_s24  ;;  %s326_s19 = sshll.u32 %s319_s10, 4  ;;  %s3216_s19 = int_to_ptr.vmem [resolvable:$true] %s326_s19 }
  0x8f   : > { %p3212_p11 = pnand %p2611_p4, %p43_p2  ;;  %s316_s15 = scalar_lea.sflag [#allocation3], %s315_s13 }
  0x90   : > { %s2826_s1 = scalar_lea.hbm %s3210_s14, 128  ;;  %s2831_s24 = scalar_lea.hbm %s3427_s0, 256 }
  0x91   : > { %p2827_p12 = scmp.ne.s32.totalorder %s3210_s14, %s2826_s1  ;;  %p2828_p8 = pneg %p3212_p11 }
  0x92   : > { %p2832_p13 = scmp.lt.u32.totalorder %s3210_s14, %s3427_s0  ;;  %p2833_p0 = scmp.lt.u32.totalorder %s2831_s24, %s2826_s1 }
  0x93   : > { %p2829_p1 = pnand %p2828_p8, %p2827_p12  ;;  %p2835_p5 = scmp.lt.u32.totalorder %s2826_s1, %s3210_s14 }
  0x94   : > { %p2834_p2 = por %p2833_p0, %p2832_p13 }
  0x95   : > { %p2830_p3 = pneg %p2829_p1 }
  0x96   : > { %p2836_p9 = por %p2835_p5, %p2834_p2 }
  0x98   : > { %p2837_p4 = pnand %p2836_p9, %p2830_p3 }
  0x9a   : > { %2840 = shalt.err (!%p2837_p4)
}
  0x9b   : > { %s2841_s13 = scalar_lea.vmem %s3216_s19, 128  ;;  %s2943_s10 = smov [#allocation2]  }
  0x9c   : > { %p2842_p12 = scmp.ne.s32.totalorder %s3216_s19, %s2841_s13  ;;  %s2846_s16 = sshll.u32 %s2943_s10, 4  ;;  %s2847_s16 = int_to_ptr.vmem [resolvable:$false] %s2846_s16 }
  0x9d   : > { %s2848_s22 = scalar_lea.vmem %s2847_s16, 256  ;;  %p2849_p6 = scmp.lt.s32.totalorder %s3216_s19, %s2847_s16 }
  0x9e   : > { %p2844_p1 = pnand %p2842_p12, %p2828_p8  ;;  %p2850_p13 = scmp.lt.s32.totalorder %s2848_s22, %s2841_s13 }
  0xa0   : > { %p2845_p10 = pneg %p2844_p1  ;;  %p2851_p0 = por %p2850_p13, %p2849_p6 }
  0xa2   : > { %p2852_p2 = pnand %p2851_p0, %p2845_p10 }
  0xa4   : > { %2855 = shalt.err (!%p2852_p2)
}
  0xa5   : > { %2601 = dma.hbm_to_vmem [thread:$0]  (!%p3212_p11), %s3210_s14, 128, %s3216_s19, %s316_s15  }
  0xa6   : > { %p3449_p3 = scmp.ne.s32.totalorder %s3440_s12, 0 }
  0xa7   : > { %s3246_s1 = sand.u32 (!%p3449_p3), 1, %s2926_s28  }
  0xa8   : > { %335 = sbr.rel (%p3449_p3) target bundleno = 2675 (0xa73), region = 52  ;;  %s2312_s24 = sshll.u32 (!%p3449_p3), %s3246_s1, 3 }
  0xa9   : > { %s338_s25 = scalar_lea.sflag (!%p3449_p3), [#allocation3], %s3246_s1  ;;  %s3252_s26 = scalar_lea.vmem (!%p3449_p3), [#allocation2], %s2312_s24 }
  0xaf   : > { %2901 = dma.done.wait (%p3192_p7), %s338_s25, 128  }
  0xb0   : > { %2903 = vsyncadd (%p3192_p7), %s338_s25, 4294967168  ;;  %p3450_p6 = scmp.eq.s32.totalorder %s3024_s11, 0 }
  0xb2   : > { %2905 = dma.done.wait (%p3450_p6), [#allocation6], 2048   ;;  %p3451_p10 = pmov %p3450_p6 }
  0xb3   : > { %p3452_p11 = pmov %p3450_p6 }
  0xb4   : > { %2907 = vsyncadd (%p3451_p10), [#allocation6], 4294965248 }
  0xb5   : > { %2909 = dma.done.wait (%p3452_p11), [#allocation9], 1024   ;;  %p3453_p8 = pmov %p3450_p6 }
  0xb6   : > { %p3454_p5 = pmov %p3450_p6 }
  0xb7   : > { %2911 = vsyncadd (%p3453_p8), [#allocation9], 4294966272 }
  0xb8   : > { %2913 = dma.done.wait (%p3454_p5), [#allocation12], 512   ;;  %p3455_p9 = pmov %p3454_p5 }
  0xb9   : > { %v2944_v0 = vmov 0.0|0.0   ;;  %vm2945_vm0 = vmmov 0   ;;  %v2946_v1 = vmov 0.0   ;;  %v395_v2 = vld [vmem:[#allocation5] sm:$0xff]  ;;  %v396_v3 = vld [vmem:[#allocation5 + $0x8] sm:$0xff]  ;;  %v397_v4 = vld [vmem:[#allocation5 + $0x10] sm:$0xff] }
  0xba   : > { %2915 = vsyncadd (%p3455_p9), [#allocation12], 4294966784  ;;  %2516 = vmatprep.subr.bf16.mxu0 %v2944_v0  ;;  %2407 = vmatprep.mubr.msk.f32.mxu0 %vm2945_vm0, %v2946_v1  ;;  %v2517_v5 = vpack.c.bf16 %v396_v3, %v395_v2  ;;  %v398_v6 = vld [vmem:[#allocation5 + $0x18] sm:$0xff]  ;;  %v478_v7 = vld [vmem:[#allocation7] sm:$0xff]  ;;  %vm399_vm1 = vcmask 261120   ;;  %s2947_s12 = smov 96  }
  0xbb   : > { %2522 = vmatprep.subr.bf16.mxu1 %v2944_v0  ;;  %2418 = vmatprep.mubr.msk.f32.mxu1 %vm2945_vm0, %v2946_v1  ;;  %v479_v8 = vld [vmem:[#allocation7 + $0x8] sm:$0xff]  ;;  %v480_v9 = vld [vmem:[#allocation7 + $0x10] sm:$0xff]  ;;  %v481_v10 = vld [vmem:[#allocation7 + $0x18] sm:$0xff]  ;;  %v2520_v11 = vpack.c.bf16 %v398_v6, %v397_v4  ;;  %s2948_s15 = smov 112   ;;  %s2949_s13 = smov 120   ;;  %vm883_vm2 = vcmask 64512  }
  0xbc   : > { %2518 = vmatpush3.bf16.msra.mxu0 %v2517_v5  ;;  %v2523_v12 = vpack.c.bf16 %v479_v8, %v478_v7  ;;  %v2526_v13 = vpack.c.bf16 %v481_v10, %v480_v9  ;;  %v3279_v14 = vld [vmem:[%s3252_s26] sm:$0xff]  ;;  %v482_v15 = vld [vmem:[#allocation7 + $0x20] sm:$0xff]  ;;  %v483_v16 = vld [vmem:[#allocation7 + $0x28] sm:$0xff]  ;;  %s2950_s10 = smov 104   ;;  %s2951_s16 = smov 64   ;;  %vm1925_vm3 = vcmask 130048  }
  0xbd   : > { %2519 = vmatprep.subr.bf16.mxu0 %v2944_v0  ;;  %v484_v17 = vld [vmem:[#allocation7 + $0x30] sm:$0xff]  ;;  %v2529_v18 = vpack.c.bf16 %v483_v16, %v482_v15  ;;  %v485_v19 = vld [vmem:[#allocation7 + $0x38] sm:$0xff]  ;;  %v486_v26 = vld [vmem:[#allocation7 + $0x40] sm:$0xff]  ;;  %s2954_s26 = smov 16   ;;  %s2956_s20 = smov 24   ;;  %vm1927_vm4 = vcmask 195584  }
  0xbe   : > { %2524 = vmatpush3.bf16.msra.mxu1 %v2523_v12  ;;  %v2532_v20 = vpack.c.bf16 %v485_v19, %v484_v17  ;;  %v487_v27 = vld [vmem:[#allocation7 + $0x48] sm:$0xff]  ;;  %v488_v29 = vld [vmem:[#allocation7 + $0x50] sm:$0xff]  ;;  %v489_v30 = vld [vmem:[#allocation7 + $0x58] sm:$0xff]  ;;  %s2345_s17 = sshll.u32 %s3024_s11, 7  ;;  %s2170_s25 = scalar_lea.sflag [#allocation4], %s3246_s1 }
  0xbf   : > { %2525 = vmatprep.subr.bf16.mxu1 %v2944_v0  ;;  %v2535_v28 = vpack.c.bf16 %v487_v27, %v486_v26  ;;  %v2538_v31 = vpack.c.bf16 %v489_v30, %v488_v29  ;;  %v2321_v32 = vld [vmem:[%s3430_s3 + $0x1] ss:$0 sm:$0xff]  ;;  %v2320_v36 = vld [vmem:[%s3430_s3] ss:$0 sm:$0xff]  ;;  %v2322_v2 = vld [vmem:[%s3430_s3 + $0x2] ss:$0 sm:$0xff]  ;;  %s3382_s22 = scalar_lea.hbm %s3435_s8, %s2345_s17 }
  0xc0   : > { %2521 = vmatpush3.bf16.msra.mxu0 %v2520_v11  ;;  %p3456_p4 = scmp.ne.s32.totalorder %s3446_s9, 0 }
  0xc1   : > { %2528 = vmatprep.subr.bf16.mxu0 %v2944_v0 }
  0xc2   : > { %2527 = vmatpush3.bf16.msra.mxu1 %v2526_v13 }
  0xc3   : > { %2408 = vmatmul.mubr.msk.f32.vlgmr.msra.gmra.mrb[0].mxu0 %vm399_vm1, %v3279_v14  ;;  %2534 = vmatprep.subr.bf16.mxu1 %v2944_v0 }
  0xc4   : > { %2429 = vmatprep.mubr.msk.f32.mxu0 %vm2945_vm0, %v2946_v1  ;;  %2530 = vmatpush3.bf16.msra.mxu0 %v2529_v18 }
  0xc5   : > { %2531 = vmatprep.subr.bf16.mxu0 %v2944_v0 }
  0xc8   : > { %2533 = vmatpush3.bf16.msra.mxu0 %v2532_v20 }
  0xc9   : > { %2453 = vmatprep.subr.mxu0 %v2946_v1 }
 0x196   : > { %v469_v21 = vpop.f32.mrb[0].mxu0 }
 0x197   : > { %474 = vrot.lane.b32.xlu0 %v469_v21, %s2947_s12  ;;  %v2409_v22 = vpop.f32.mrb[1].mxu0  ;;  %2419 = vmatmul.mubr.msk.f32.vlgmr.msra.gmra.mrb[0].mxu1 %vm399_vm1, %v469_v21  ;;  %s2955_s12 = smov 8  }
 0x198   : > { %2440 = vmatprep.mubr.msk.f32.mxu1 %vm2945_vm0, %v2946_v1  ;;  %2536 = vmatpush3.bf16.msra.mxu1 %v2535_v28 }
 0x199   : > { %2537 = vmatprep.subr.bf16.mxu1 %v2944_v0 }
 0x19c   : > { %2539 = vmatpush3.bf16.msra.mxu1 %v2538_v31 }
 0x19d   : > { %2443 = vmatprep.subr.mxu1 %v2946_v1 }
 0x209   : > { %v475_v23 = vpop.permute.xlu0 %474 }
 0x20a   : > { %2430 = vmatmul.mubr.msk.f32.vlgmr.msra.gmra.mrb[2].mxu0 %vm399_vm1, %v475_v23 }
 0x20b   : > { %2455 = vmatprep.mubr.msk.f32.mxu0 %vm2945_vm0, %v2946_v1 }
 0x26a   : > { %v579_v24 = vpop.f32.mrb[0].mxu1 }
 0x26b   : > { %v2420_v25 = vpop.f32.mrb[1].mxu1  ;;  %v580_v37 = vadd.f32 %v2320_v36, %v579_v24 }
 0x26d   : > { %v727_v38 = vmul.f32 0.35355338, %v580_v37 }
 0x2dd   : > { %v651_v33 = vpop.f32.mrb[2].mxu0 }
 0x2de   : > { %v652_v34 = vadd.f32 %v2321_v32, %v651_v33  ;;  %v2431_v35 = vpop.f32.mrb[3].mxu0 }
 0x2e0   : > { %739 = vrot.lane.b32.xlu1 %v652_v34, %s2948_s15  ;;  %736 = vrot.lane.b32.xlu0 %v652_v34, %s2949_s13 }
 0x2e4   : > { %742 = vrot.lane.b32.xlu1 %v652_v34, %s2950_s10  ;;  %476 = vrot.lane.b32.xlu0 %v469_v21, %s2951_s16 }
 0x2e8   : > { %729 = vrot.lane.b32.xlu1 %v727_v38, %s2949_s13  ;;  %731 = vrot.lane.b32.xlu0 %v727_v38, %s2948_s15 }
 0x2ec   : > { %733 = vrot.lane.b32.xlu1 %v727_v38, %s2950_s10 }
 0x306   : > { %755 = vxpose.xlu0.b32.start.end [1/1] (short) (narrow) %v652_v34, 8 }
 0x352   : > { %v740_v39 = vpop.permute.xlu1 %739  ;;  %v737_v40 = vpop.permute.xlu0 %736 }
 0x353   : > { %819 = vxpose.xlu0.b32.start.end [1/1] (short) (narrow) %v740_v39, 8  ;;  %787 = vxpose.xlu1.b32.start.end [1/1] (short) (narrow) %v737_v40, 8 }
 0x356   : > { %v743_v41 = vpop.permute.xlu1 %742  ;;  %v477_v42 = vpop.permute.xlu0 %476 }
 0x357   : > { %851 = vxpose.xlu0.b32.start.end [1/1] (short) (narrow) %v743_v41, 8  ;;  %2441 = vmatmul.mubr.msk.f32.vlgmr.msra.gmra.mrb[2].mxu1 %vm399_vm1, %v477_v42 }
 0x358   : > { %2445 = vmatprep.mubr.msk.f32.mxu1 %vm2945_vm0, %v2946_v1 }
 0x35a   : > { %v732_v43 = vpop.permute.xlu0 %731  ;;  %v730_v45 = vpop.permute.xlu1 %729 }
 0x35e   : > { %v734_v46 = vpop.permute.xlu1 %733 }
 0x386   : > { %v771_v44 = vpop.trf.xlu0 }
 0x387   : > { %2444 = vmatpush3.msra.mxu1 %v771_v44 }
 0x388   : > { %2446 = vmatmul.mubr.msk.f32.vlgmr.msra.gmra.mrb[4].mxu1 %vm883_vm2, %v727_v38  ;;  %2448 = vmatprep.subr.mxu1 %v2946_v1 }
 0x389   : > { %2450 = vmatprep.mubr.msk.f32.mxu1 %vm2945_vm0, %v2946_v1 }
 0x3d3   : > { %v803_v47 = vpop.trf.xlu1  ;;  %v835_v48 = vpop.trf.xlu0 }
 0x3d4   : > { %2449 = vmatpush3.msra.mxu1 %v803_v47  ;;  %2454 = vmatpush3.msra.mxu0 %v835_v48 }
 0x3d5   : > { %2451 = vmatmul.mubr.msk.f32.vlgmr.msra.gmra.mrb[6].mxu1 %vm883_vm2, %v730_v45  ;;  %2456 = vmatmul.mubr.msk.f32.vlgmr.msra.gmra.mrb[4].mxu0 %vm883_vm2, %v732_v43 }
 0x3d6   : > { %2458 = vmatprep.subr.mxu1 %v2946_v1  ;;  %2460 = vmatprep.mubr.msk.f32.mxu1 %vm2945_vm0, %v2946_v1 }
 0x3d7   : > { %v867_v49 = vpop.trf.xlu0  ;;  %2463 = vmatprep.subr.mxu0 %v2946_v1  ;;  %2465 = vmatprep.mubr.msk.f32.mxu0 %vm2945_vm0, %v2946_v1 }
 0x3d8   : > { %2459 = vmatpush3.msra.mxu1 %v867_v49 }
 0x3d9   : > { %2461 = vmatmul.mubr.msk.f32.vlgmr.msra.gmra.mrb[8].mxu1 %vm883_vm2, %v734_v46  ;;  %2468 = vmatprep.subr.mxu1 %v2946_v1 }
 0x3da   : > { %2470 = vmatprep.mubr.msk.f32.mxu1 %vm2945_vm0, %v2946_v1 }
 0x42a   : > { %v723_v50 = vpop.f32.mrb[2].mxu1 }
 0x42b   : > { %v2442_v51 = vpop.f32.mrb[3].mxu1  ;;  %v724_v3 = vadd.f32 %v2322_v2, %v723_v50 }
 0x45b   : > { %v952_v52 = vpop.f32.mrb[4].mxu1 }
 0x45c   : > { %v2447_v53 = vpop.f32.mrb[5].mxu1  ;;  %v1172_v54 = vsel %vm883_vm2, %v952_v52, -inf }
 0x45d   : > { %1173 = vmax.xlane.f32.xlu0 %v1172_v54  ;;  %v1930_v53 = vld [vmem:[#allocation8 + $0x8] sm:$0xff] }
 0x4a8   : > { %v1024_v55 = vpop.f32.mrb[6].mxu1  ;;  %v1096_v56 = vpop.f32.mrb[4].mxu0 }
 0x4a9   : > { %v2452_v57 = vpop.f32.mrb[7].mxu1  ;;  %v2457_v58 = vpop.f32.mrb[5].mxu0  ;;  %v1175_v59 = vsel %vm883_vm2, %v1024_v55, -inf  ;;  %v1178_v63 = vsel %vm883_vm2, %v1096_v56, -inf }
 0x4aa   : > { %1176 = vmax.xlane.f32.xlu1 %v1175_v59  ;;  %v1781_v58 = vlaneseq  ;;  %v2953_v59 = vmov 1934713408  }
 0x4ac   : > { %v1168_v60 = vpop.f32.mrb[8].mxu1 }
 0x4ad   : > { %v2462_v61 = vpop.f32.mrb[9].mxu1  ;;  %v1181_v62 = vsel %vm883_vm2, %v1168_v60, -inf }
 0x4ae   : > { %1182 = vmax.xlane.f32.xlu0 %v1181_v62  ;;  %1179 = vmax.xlane.f32.xlu1 %v1178_v63  ;;  %v1782_v62 = vshrl.u32 %v1781_v58, 7 }
 0x4bf   : > { %746 = vrot.lane.b32.xlu1 %v724_v3, %s2949_s13 }
 0x4c3   : > { %752 = vrot.lane.b32.xlu1 %v724_v3, %s2950_s10 }
 0x4c4   : > { %749 = vrot.lane.b32.xlu0 %v724_v3, %s2948_s15  ;;  %s393_s15 = scalar_lea.vmem [#allocation13], %s2312_s24  ;;  %s2957_s24 = smov [#allocation13]  }
 0x4c5   : > { %s2183_s13 = sshll.u32 %s393_s15, 4  ;;  %s3384_s13 = int_to_ptr.vmem [resolvable:$true] %s2183_s13 }
 0x4c6   : > { %s2856_s11 = scalar_lea.vmem %s3384_s13, 128 }
 0x4c7   : > { %p2857_p7 = scmp.ne.s32.totalorder %s3384_s13, %s2856_s11 }
 0x4c9   : > { %p2858_p12 = pnand %p2857_p7, %p3456_p4 }
 0x4cb   : > { %p2859_p1 = pneg %p2858_p12 }
 0x4ea   : > { %v1174_v4 = vpop.xlane.xlu0 %1173 }
 0x4eb   : > { %v1184_v5 = vsub.f32 %v952_v52, %v1174_v4  ;;  %v1929_v52 = vld [vmem:[#allocation8] sm:$0xff] }
 0x4ec   : > { %v2541_v54 = vpack.c.bf16 %v1930_v53, %v1929_v52 }
 0x4ed   : > { %v1188_v6 = vmul.f32 1.442695, %v1184_v5 }
 0x4ef   : > { %2670 = vpow2.f32 %v1188_v6 }
 0x4f9   : > { %v2671_v7 = vpop.eup %2670 }
 0x4fa   : > { %v1196_v8 = vsel %vm883_vm2, %v2671_v7, 0.0 }
 0x4fb   : > { %1197 = vadd.xlane.f32.xlu1 %v1196_v8 }
 0x537   : > { %v1177_v9 = vpop.xlane.xlu1 %1176 }
 0x538   : > { %v1185_v10 = vsub.f32 %v1024_v55, %v1177_v9 }
 0x53a   : > { %v1190_v11 = vmul.f32 1.442695, %v1185_v10 }
 0x53b   : > { %v1183_v12 = vpop.xlane.xlu0 %1182  ;;  %v1180_v13 = vpop.xlane.xlu1 %1179 }
 0x53c   : > { %2672 = vpow2.f32 %v1190_v11  ;;  %v1187_v15 = vsub.f32 %v1168_v60, %v1183_v12  ;;  %v1186_v16 = vsub.f32 %v1096_v56, %v1180_v13  ;;  %v2952_v56 = vmov 1983009808  }
 0x53d   : > { %v1779_v57 = vunpack.c.l.s4 %v2952_v56  ;;  %v1811_v60 = vunpack.c.l.s4 %v2953_v59  ;;  %v2016_v56 = vld [vmem:[#allocation10 + $0x10] sm:$0xff]  ;;  %v2091_v59 = vld [vmem:[#allocation11] sm:$0xff] }
 0x53e   : > { %v1194_v17 = vmul.f32 1.442695, %v1187_v15  ;;  %v1192_v18 = vmul.f32 1.442695, %v1186_v16 }
 0x53f   : > { %v747_v25 = vpop.permute.xlu1 %746  ;;  %v750_v26 = vpop.permute.xlu0 %749  ;;  %v1780_v61 = vunpack.c.0.s8 %v1779_v57  ;;  %v2017_v57 = vld [vmem:[#allocation10 + $0x18] sm:$0xff] }
 0x540   : > { %2674 = vpow2.f32 %v1194_v17  ;;  %v2550_v58 = vpack.c.bf16 %v2017_v57, %v2016_v56 }
 0x541   : > { %2676 = vpow2.f32 %v1192_v18  ;;  %v1783_v4 = vsub.s32 %v1780_v61, %v1782_v62  ;;  %v2093_v61 = vld [vmem:[#allocation11 + $0x10] sm:$0xff] }
 0x543   : > { %v753_v27 = vpop.permute.xlu1 %752 }
 0x546   : > { %v2673_v19 = vpop.eup %2672 }
 0x547   : > { %v1199_v20 = vsel %vm883_vm2, %v2673_v19, 0.0 }
 0x548   : > { %1200 = vadd.xlane.f32.xlu0 %v1199_v20  ;;  %v1931_v20 = vld [vmem:[#allocation8 + $0x10] sm:$0xff] }
 0x54a   : > { %v2675_v21 = vpop.eup %2674 }
 0x54b   : > { %v2677_v22 = vpop.eup %2676  ;;  %v1205_v23 = vsel %vm883_vm2, %v2675_v21, 0.0 }
 0x54c   : > { %1206 = vadd.xlane.f32.xlu1 %v1205_v23  ;;  %v1202_v24 = vsel %vm883_vm2, %v2677_v22, 0.0 }
 0x54d   : > { %1203 = vadd.xlane.f32.xlu0 %v1202_v24 }
 0x57a   : > { %1216 = vxpose.xlu0.b32.start.end [1/1] (short) (narrow) %v724_v3, 8  ;;  %v1812_v3 = vunpack.c.0.s8 %v1811_v60  ;;  %v2092_v60 = vld [vmem:[#allocation11 + $0x8] sm:$0xff] }
 0x57c   : > { %v1815_v10 = vsub.s32 %v1812_v3, %v1782_v62  ;;  %v2553_v62 = vpack.c.bf16 %v2092_v60, %v2091_v59 }
 0x57e   : > { %1280 = vxpose.xlu0.b32.start.end [1/1] (short) (narrow) %v750_v26, 8 }
 0x57f   : > { %1248 = vxpose.xlu1.b32.start.end [1/1] (short) (narrow) %v747_v25, 8 }
 0x582   : > { %1312 = vxpose.xlu0.b32.start.end [1/1] (short) (narrow) %v753_v27, 8 }
 0x588   : > { %v1198_v28 = vpop.xlane.xlu1 %1197 }
 0x589   : > { %2678 = vrcp.f32 %v1198_v28 }
 0x593   : > { %v2679_v29 = vpop.eup %2678 }
 0x594   : > { %v1212_v30 = vmul.f32 %v2679_v29, %v2671_v7 }
 0x596   : > { %2464 = vmatpush3.xpose.msk.msra.mxu0 %vm883_vm2, %v1212_v30 }
 0x597   : > { %2473 = vmatprep.subr.mxu0 %v2946_v1 }
 0x5d5   : > { %v1201_v31 = vpop.xlane.xlu0 %1200 }
 0x5d6   : > { %2680 = vrcp.f32 %v1201_v31 }
 0x5d9   : > { %v1207_v35 = vpop.xlane.xlu1 %1206 }
 0x5da   : > { %v1204_v34 = vpop.xlane.xlu0 %1203 }
 0x5db   : > { %2682 = vrcp.f32 %v1204_v34 }
 0x5dc   : > { %2684 = vrcp.f32 %v1207_v35  ;;  %v2014_v35 = vld [vmem:[#allocation10] sm:$0xff] }
 0x5e0   : > { %v2681_v32 = vpop.eup %2680 }
 0x5e1   : > { %v1213_v33 = vmul.f32 %v2681_v32, %v2673_v19 }
 0x5e3   : > { %2469 = vmatpush3.xpose.msk.msra.mxu1 %vm883_vm2, %v1213_v33 }
 0x5e4   : > { %2478 = vmatprep.subr.mxu1 %v2946_v1 }
 0x5e5   : > { %v2683_v36 = vpop.eup %2682 }
 0x5e6   : > { %v1214_v37 = vmul.f32 %v2683_v36, %v2677_v22  ;;  %v2685_v39 = vpop.eup %2684  ;;  %v2015_v36 = vld [vmem:[#allocation10 + $0x8] sm:$0xff] }
 0x5e7   : > { %v1215_v41 = vmul.f32 %v2685_v39, %v2675_v21  ;;  %v1932_v21 = vld [vmem:[#allocation8 + $0x18] sm:$0xff] }
 0x5e8   : > { %v2544_v26 = vpack.c.bf16 %v1932_v21, %v1931_v20 }
 0x5fa   : > { %v1232_v38 = vpop.trf.xlu0 }
 0x5fb   : > { %2466 = vmatmul.mubr.msk.f32.vlgmr.msra.gmra.mrb[6].mxu0 %vm883_vm2, %v1232_v38 }
 0x5fc   : > { %2474 = vmatpush3.xpose.msk.msra.mxu0 %vm883_vm2, %v1214_v37  ;;  %2475 = vmatprep.mubr.msk.f32.mxu0 %vm2945_vm0, %v2946_v1  ;;  %v2547_v37 = vpack.c.bf16 %v2015_v36, %v2014_v35 }
 0x5fd   : > { %2540 = vmatprep.subr.bf16.mxu0 %v2944_v0 }
 0x5fe   : > { %v1296_v40 = vpop.trf.xlu0 }
 0x5ff   : > { %v1264_v42 = vpop.trf.xlu1  ;;  %2476 = vmatmul.mubr.msk.f32.vlgmr.msra.gmra.mrb[8].mxu0 %vm883_vm2, %v1296_v40 }
 0x600   : > { %2471 = vmatmul.mubr.msk.f32.vlgmr.msra.gmra.mrb[10].mxu1 %vm883_vm2, %v1264_v42  ;;  %2491 = vmatprep.mubr.msk.f32.mxu0 %vm2945_vm0, %v2946_v1 }
 0x601   : > { %2479 = vmatpush3.xpose.msk.msra.mxu1 %vm883_vm2, %v1215_v41  ;;  %2480 = vmatprep.mubr.msk.f32.mxu1 %vm2945_vm0, %v2946_v1 }
 0x602   : > { %v1328_v43 = vpop.trf.xlu0  ;;  %2546 = vmatprep.subr.bf16.mxu1 %v2944_v0  ;;  %2542 = vmatpush3.bf16.msra.mxu0 %v2541_v54 }
 0x603   : > { %2543 = vmatprep.subr.bf16.mxu0 %v2944_v0 }
 0x604   : > { %2481 = vmatmul.mubr.msk.f32.vlgmr.msra.gmra.mrb[12].mxu1 %vm883_vm2, %v1328_v43 }
 0x605   : > { %2502 = vmatprep.mubr.msk.f32.mxu1 %vm2945_vm0, %v2946_v1  ;;  %2548 = vmatpush3.bf16.msra.mxu1 %v2547_v37 }
 0x606   : > { %2545 = vmatpush3.bf16.msra.mxu0 %v2544_v26  ;;  %2549 = vmatprep.subr.bf16.mxu1 %v2944_v0 }
 0x607   : > { %2552 = vmatprep.subr.bf16.mxu0 %v2944_v0 }
 0x609   : > { %2551 = vmatpush3.bf16.msra.mxu1 %v2550_v58 }
 0x6ce   : > { %v1416_v44 = vpop.f32.mrb[6].mxu0 }
 0x6cf   : > { %v2467_v45 = vpop.f32.mrb[7].mxu0  ;;  %1648 = vxpose.xlu1.b32.start.end [1/1] (short) (narrow) %v1416_v44, 8 }
 0x6d2   : > { %v1568_v46 = vpop.f32.mrb[8].mxu0 }
 0x6d3   : > { %v1492_v47 = vpop.f32.mrb[10].mxu1  ;;  %v2477_v48 = vpop.f32.mrb[9].mxu0  ;;  %1712 = vxpose.xlu1.b32.start.end [1/1] (short) (narrow) %v1568_v46, 8 }
 0x6d4   : > { %1680 = vxpose.xlu0.b32.start.end [1/1] (short) (narrow) %v1492_v47, 8  ;;  %v2472_v49 = vpop.f32.mrb[11].mxu1 }
 0x6d7   : > { %v1644_v50 = vpop.f32.mrb[12].mxu1 }
 0x6d8   : > { %1744 = vxpose.xlu0.b32.start.end [1/1] (short) (narrow) %v1644_v50, 8  ;;  %v2482_v51 = vpop.f32.mrb[13].mxu1 }
 0x74f   : > { %v1664_v55 = vpop.trf.xlu1 }
 0x753   : > { %v1728_v2 = vpop.trf.xlu1 }
 0x754   : > { %v1696_v63 = vpop.trf.xlu0  ;;  %v1776_v5 = vcombine.low %v1664_v55, %v1728_v2  ;;  %v1777_v6 = vcombine.high %v1664_v55, %v1728_v2 }
 0x756   : > { %v1784_v11 = vrot.slane %v1776_v5, %v1783_v4  ;;  %v1791_v12 = vrot.slane %v1777_v6, %v1783_v4 }
 0x758   : > { %v1760_v7 = vpop.trf.xlu0 }
 0x759   : > { %v1792_v8 = vcombine.low %v1696_v63, %v1760_v7  ;;  %v1793_v9 = vcombine.high %v1696_v63, %v1760_v7  ;;  %v2094_v63 = vld [vmem:[#allocation11 + $0x18] sm:$0xff] }
 0x75a   : > { %v2556_v2 = vpack.c.bf16 %v2094_v63, %v2093_v61 }
 0x75b   : > { %v1800_v13 = vrot.slane %v1792_v8, %v1783_v4  ;;  %v1807_v15 = vrot.slane %v1793_v9, %v1783_v4 }
 0x75d   : > { %v1808_v16 = vcombine.low %v1784_v11, %v1800_v13  ;;  %v1809_v17 = vcombine.high %v1784_v11, %v1800_v13  ;;  %v1824_v18 = vcombine.low %v1791_v12, %v1807_v15  ;;  %v1825_v19 = vcombine.high %v1791_v12, %v1807_v15 }
 0x75f   : > { %v1816_v22 = vrot.slane %v1808_v16, %v1815_v10  ;;  %v1823_v23 = vrot.slane %v1809_v17, %v1815_v10  ;;  %v1832_v24 = vrot.slane %v1824_v18, %v1815_v10  ;;  %v1839_v25 = vrot.slane %v1825_v19, %v1815_v10 }
 0x761   : > { %v1844_v27 = vcombine.low %v1816_v22, %v1823_v23  ;;  %v2338_v28 = vcombine.high %v1816_v22, %v1823_v23  ;;  %v1860_v29 = vcombine.low %v1832_v24, %v1839_v25  ;;  %v2339_v30 = vcombine.high %v1832_v24, %v1839_v25 }
 0x763   : > { %v1851_v31 = vrot.slane %v1844_v27, %v1783_v4  ;;  %v1859_v32 = vrot.slane %v2338_v28, %v1783_v4  ;;  %v1867_v33 = vrot.slane %v1860_v29, %v1783_v4  ;;  %v1875_v34 = vrot.slane %v2339_v30, %v1783_v4 }
 0x765   : > { %v1877_v38 = vcombine.high %v1851_v31, %v1859_v32  ;;  %v1893_v39 = vcombine.high %v1867_v33, %v1875_v34  ;;  %v1876_v40 = vcombine.low %v1851_v31, %v1859_v32  ;;  %v1892_v41 = vcombine.low %v1867_v33, %v1875_v34 }
 0x767   : > { %v1891_v42 = vrot.slane %v1877_v38, %v1815_v10  ;;  %v1907_v43 = vrot.slane %v1893_v39, %v1815_v10  ;;  %v1884_v44 = vrot.slane %v1876_v40, %v1815_v10  ;;  %v1900_v45 = vrot.slane %v1892_v41, %v1815_v10 }
 0x769   : > { %v1910_v46 = vcombine.low %v1891_v42, %v1907_v43  ;;  %v1909_v47 = vcombine.high %v1884_v44, %v1900_v45  ;;  %v1908_v48 = vcombine.low %v1884_v44, %v1900_v45  ;;  %v1911_v49 = vcombine.high %v1891_v42, %v1907_v43 }
 0x76b   : > { %1917 = vrot.lane.b32.xlu0 %v1910_v46, %s2954_s26  ;;  %1913 = vrot.lane.b32.xlu1 %v1909_v47, %s2955_s12  ;;  %s2860_s26 = sshll.u32 %s2957_s24, 4  ;;  %s2861_s26 = int_to_ptr.vmem [resolvable:$false] %s2860_s26 }
 0x76c   : > { %s2862_s12 = scalar_lea.vmem %s2861_s26, 256  ;;  %p2863_p13 = scmp.lt.s32.totalorder %s3384_s13, %s2861_s26 }
 0x76d   : > { %p2864_p0 = scmp.lt.s32.totalorder %s2862_s12, %s2856_s11 }
 0x76f   : > { %1921 = vrot.lane.b32.xlu1 %v1911_v49, %s2956_s20  ;;  %p2865_p2 = por %p2864_p0, %p2863_p13 }
 0x771   : > { %p2866_p3 = pnand %p2865_p2, %p2859_p1 }
 0x7dd   : > { %v1914_v50 = vpop.permute.xlu1 %1913  ;;  %v1918_v51 = vpop.permute.xlu0 %1917 }
 0x7de   : > { %v1924_v52 = vsel %vm883_vm2, %v1908_v48, %v1914_v50 }
 0x7df   : > { %v1926_v54 = vsel %vm1925_vm3, %v1924_v52, %v1918_v51 }
 0x7e1   : > { %v1922_v53 = vpop.permute.xlu1 %1921 }
 0x7e2   : > { %v1928_v55 = vsel %vm1927_vm4, %v1926_v54, %v1922_v53 }
 0x7e3   : > { %2492 = vmatmul.mubr.msk.f32.vlgmr.msra.gmra.mrb[10].mxu0 %vm399_vm1, %v1928_v55 }
 0x7e4   : > { %2513 = vmatprep.mubr.msk.f32.mxu0 %vm2945_vm0, %v2946_v1  ;;  %2554 = vmatpush3.bf16.msra.mxu0 %v2553_v62  ;;  %v2340_v1 = vld [vmem:[%s3432_s5] ss:$0 sm:$0xff] }
 0x7e5   : > { %2555 = vmatprep.subr.bf16.mxu0 %v2944_v0 }
 0x7e8   : > { %2557 = vmatpush3.bf16.msra.mxu0 %v2556_v2 }
 0x8b6   : > { %v2009_v3 = vpop.f32.mrb[10].mxu0 }
 0x8b7   : > { %v2010_v4 = vadd.f32 %v2340_v1, %v2009_v3  ;;  %v2493_v5 = vpop.f32.mrb[11].mxu0 }
 0x8b9   : > { %v2013_v6 = vadd.f32 %v2010_v4, %v3279_v14 }
 0x8bb   : > { %2503 = vmatmul.mubr.msk.f32.vlgmr.msra.gmra.mrb[14].mxu1 %vm399_vm1, %v2013_v6 }
 0x98e   : > { %v2087_v7 = vpop.f32.mrb[14].mxu1 }
 0x98f   : > { %v2504_v8 = vpop.f32.mrb[15].mxu1  ;;  %2514 = vmatmul.mubr.msk.f32.vlgmr.msra.gmra.mrb[12].mxu0 %vm399_vm1, %v2087_v7 }
 0xa62   : > { %v2164_v0 = vpop.f32.mrb[12].mxu0 }
 0xa63   : > { %v2165_v9 = vadd.f32 %v2164_v0, %v2013_v6  ;;  %v2515_v10 = vpop.f32.mrb[13].mxu0 }
 0xa65   : > { %2168 = vst.msk [vmem:[%s393_s15] sm:$0xff] %vm399_vm1, %v2165_v9 }
 0xa66   : > { %2869 = shalt.err (!%p2866_p3)
}
 0xa67   : > { %s2870_s1 = scalar_lea.hbm %s3382_s22, 128  ;;  %s2874_s19 = scalar_lea.hbm %s3435_s8, 256 }
 0xa68   : > { %p2871_p6 = scmp.ne.s32.totalorder %s3382_s22, %s2870_s1  ;;  %p2875_p8 = scmp.lt.u32.totalorder %s3382_s22, %s3435_s8 }
 0xa69   : > { %p2876_p5 = scmp.lt.u32.totalorder %s2874_s19, %s2870_s1  ;;  %p2878_p7 = scmp.lt.u32.totalorder %s2870_s1, %s3382_s22 }
 0xa6a   : > { %p2872_p10 = pnand %p2871_p6, %p3456_p4 }
 0xa6b   : > { %p2877_p9 = por %p2876_p5, %p2875_p8 }
 0xa6c   : > { %p2873_p11 = pneg %p2872_p10 }
 0xa6d   : > { %p2879_p12 = por %p2878_p7, %p2877_p9 }
 0xa6f   : > { %p2880_p1 = pnand %p2879_p12, %p2873_p11 }
 0xa71   : > { %2883 = shalt.err (!%p2880_p1)
}
 0xa72   : > { %2580 = dma.vmem_to_hbm [thread:$0]  (%p3456_p4), %s3384_s13, 128, %s3382_s22, %s2170_s25  }
 0xa73 PF: > { %s2195_s10 = sand.u32 1, %s2922_s27   ;;  %p3457_p13 = scmp.ne.s32.totalorder %s3447_s21, 0 }
 0xa74   : > { %p3458_p0 = scmp.ge.s32.totalorder %s2934_s30, 2  ;;  %s2196_s16 = scalar_lea.sflag [#allocation4], %s2195_s10 }
 0xa76   : > { %p2603_p2 = pnand %p3458_p0, %p3457_p13 }
 0xa78   : > { %2917 = dma.done.wait (!%p2603_p2), %s2196_s16, 128  }
 0xa79   : > { %2919 = vsyncadd (!%p2603_p2), %s2196_s16, 4294967168  ;;  %p24_p3 = scmp.ge.s32.totalorder %s3176_s23, 4   ;;  %s3459_s27 = smov %s2926_s28 }
 0xa7a   : > { %s3460_s28 = smov %s2930_s29  ;;  %s3461_s29 = smov %s3188_s18 }
 0xa7b   : > { %s3462_s30 = smov %s3176_s23  ;;  %26 = sbr.rel (!%p24_p3) target bundleno = 10 (0xa), region = 117 }
 0xa82   :  { %2201 = vsyncpa [#allocation3], 1 }
 0xa83   :  { %2203 = vsyncpa [#allocation3 + $0x1], 1 }
 0xa84   :  { %2204 = vsyncpa [#allocation6], 1 }
 0xa85   :  { %2205 = vsyncpa [#allocation9], 1 }
 0xa86   :  { %2206 = vsyncpa [#allocation12], 1 }
 0xa87   :  { %2207 = vsyncpa [#allocation4], 1 }
 0xa88   :  { %2209 = vsyncpa [#allocation4 + $0x1], 1 }

</bundles_post_ra>
